<compile_context>
chip_gen: v7x
topology: tpu7x:2x2x1
jax: 0.10.0
libtpu: 0.0.40
codegen_flags: <defaults>
</compile_context>

<pallas_src>
import math
from functools import partial

import jax
import jax.numpy as jnp
from jax import lax
from jax.experimental import pallas as pl
from jax.experimental.pallas import tpu as pltpu

BN_SCALE = 1.0 / math.sqrt(1.0 + 1e-5)   # eval BatchNorm2d with default init
HEADS = 8


def _round_up(n, m):
    return ((n + m - 1) // m) * m


def _row_tile(n, candidates):
    for t in candidates:
        if n % t == 0:
            return t
    return n   # single full block


# ----------------------------------------------------------------------------
# Pallas kernels
# ----------------------------------------------------------------------------
def _apply_activation(acc, activation):
    if activation == "relu":
        return jnp.maximum(acc, 0.0)
    if activation == "mish":
        # PyTorch Mish: x * tanh(softplus(x)), softplus threshold = 20
        sp = jnp.where(acc > 20.0, acc, jnp.log1p(jnp.exp(jnp.minimum(acc, 20.0))))
        return acc * jnp.tanh(sp)
    return acc


def _matmul_kernel(x_ref, w_ref, b_ref, o_ref, *, activation):
    acc = jnp.dot(x_ref[...], w_ref[...], preferred_element_type=jnp.float32)
    o_ref[...] = _apply_activation(acc + b_ref[...], activation)


def _matmul_res_kernel(x_ref, w_ref, b_ref, r_ref, o_ref, *, activation):
    acc = jnp.dot(x_ref[...], w_ref[...], preferred_element_type=jnp.float32)
    o_ref[...] = _apply_activation(acc + b_ref[...], activation) + r_ref[...]


@partial(jax.jit, static_argnames=("activation",))
def matmul(x, w, b, activation="none", residual=None):
    """bf16 (M,K)@(K,N) + b [+ residual] with fused activation.

    Grid = (N tiles, M tiles); the weight block index only changes with the
    slow (N) axis so it stays resident across the inner M sweep.
    """
    M, K = x.shape
    N = w.shape[1]
    x = x.astype(jnp.bfloat16)
    w = w.astype(jnp.bfloat16)
    b = b.astype(jnp.float32).reshape(1, N)

    Mp = _round_up(M, 8)
    if Mp != M:
        x = jnp.pad(x, ((0, Mp - M), (0, 0)))
        if residual is not None:
            residual = jnp.pad(residual, ((0, Mp - M), (0, 0)))
    TM = _row_tile(Mp, (512, 256, 128, 64, 32, 16))
    TN = N
    if N > 512:
        for t in (512, 256, 128):
            if N % t == 0:
                TN = t
                break
    grid = (N // TN, Mp // TM)

    in_specs = [
        pl.BlockSpec((TM, K), lambda j, i: (i, 0)),
        pl.BlockSpec((K, TN), lambda j, i: (0, j)),
        pl.BlockSpec((1, TN), lambda j, i: (0, j)),
    ]
    args = [x, w, b]
    if residual is None:
        kern = partial(_matmul_kernel, activation=activation)
    else:
        kern = partial(_matmul_res_kernel, activation=activation)
        in_specs.append(pl.BlockSpec((TM, TN), lambda j, i: (i, j)))
        args.append(residual.astype(jnp.float32))

    out = pl.pallas_call(
        kern,
        out_shape=jax.ShapeDtypeStruct((Mp, N), jnp.float32),
        grid=grid,
        in_specs=in_specs,
        out_specs=pl.BlockSpec((TM, TN), lambda j, i: (i, j)),
        compiler_params=pltpu.CompilerParams(
            dimension_semantics=("parallel", "parallel")),
    )(*args)
    return out[:M] if Mp != M else out


def _layernorm_kernel(x_ref, g_ref, b_ref, o_ref):
    x = x_ref[...]
    mu = jnp.mean(x, axis=-1, keepdims=True)
    xc = x - mu
    var = jnp.mean(xc * xc, axis=-1, keepdims=True)
    o_ref[...] = xc * lax.rsqrt(var + 1e-5) * g_ref[...] + b_ref[...]


@jax.jit
def layernorm(x, g, b):
    """LayerNorm over the last (channel) dim of a (rows, C) slab."""
    R, C = x.shape
    Rp = _round_up(R, 8)
    if Rp != R:
        x = jnp.pad(x, ((0, Rp - R), (0, 0)))
    TR = _row_tile(Rp, (1024, 512, 256, 128, 64, 32, 16, 8))
    out = pl.pallas_call(
        _layernorm_kernel,
        out_shape=jax.ShapeDtypeStruct((Rp, C), jnp.float32),
        grid=(Rp // TR,),
        in_specs=[
            pl.BlockSpec((TR, C), lambda i: (i, 0)),
            pl.BlockSpec((1, C), lambda i: (0, 0)),
            pl.BlockSpec((1, C), lambda i: (0, 0)),
        ],
        out_specs=pl.BlockSpec((TR, C), lambda i: (i, 0)),
        compiler_params=pltpu.CompilerParams(dimension_semantics=("parallel",)),
    )(x, g.reshape(1, C), b.reshape(1, C))
    return out[:R] if Rp != R else out


def _xca_kernel(q_ref, k_ref, v_ref, t_ref, o_ref, *, heads):
    """Cross-covariance attention, all heads of one batch element at once.

    q/k/v are (T, C) with C = heads*D; the per-head (D,D) attention matrices
    are computed as one block-diagonal (C,C) matrix so every matmul / store is
    lane-dense.
    """
    q = q_ref[0]
    k = k_ref[0]
    v = v_ref[0]
    C = q.shape[-1]
    D = C // heads
    # F.normalize(q.transpose(-2,-1), dim=-1): per-channel norm over tokens.
    qn = q * lax.rsqrt(jnp.maximum(jnp.sum(q * q, axis=0, keepdims=True), 1e-24))
    # F.normalize(k, dim=-1): per-token norm over each head's D channels.
    sel = (lax.broadcasted_iota(jnp.int32, (C, heads), 0) // D ==
           lax.broadcasted_iota(jnp.int32, (C, heads), 1)).astype(jnp.float32)
    k2 = jnp.dot(k * k, sel, preferred_element_type=jnp.float32)        # (T, heads)
    k2 = lax.dot_general(k2, sel, (((1,), (1,)), ((), ())),
                         preferred_element_type=jnp.float32)            # (T, C)
    kn = k * lax.rsqrt(jnp.maximum(k2, 1e-24))
    # fold the per-head temperature into q's columns (row scale of attn)
    qn = qn * t_ref[...]
    # qn^T @ kn over tokens -> (C, C); per-head block-diagonal softmax
    a = lax.dot_general(qn, kn, (((0,), (0,)), ((), ())),
                        preferred_element_type=jnp.float32)
    ri = lax.broadcasted_iota(jnp.int32, (C, C), 0) // D
    ci = lax.broadcasted_iota(jnp.int32, (C, C), 1) // D
    a = jnp.where(ri == ci, a, -jnp.inf)
    a = a - jnp.max(a, axis=-1, keepdims=True)
    e = jnp.exp(a)
    p = e * pl.reciprocal(jnp.sum(e, axis=-1, keepdims=True), approx=True)
    # (attn @ v^T)^T == v @ attn^T -> token-major (T, C), heads merged in lanes
    o_ref[0] = lax.dot_general(v, p, (((1,), (1,)), ((), ())),
                               preferred_element_type=jnp.float32)


@partial(jax.jit, static_argnames=("heads",))
def xca_attention(q, k, v, temp_c, heads=HEADS):
    B, T, C = q.shape
    spec = pl.BlockSpec((1, T, C), lambda b: (b, 0, 0))
    return pl.pallas_call(
        partial(_xca_kernel, heads=heads),
        out_shape=jax.ShapeDtypeStruct((B, T, C), jnp.float32),
        grid=(B,),
        in_specs=[spec, spec, spec, pl.BlockSpec((1, C), lambda b: (0, 0))],
        out_specs=spec,
        compiler_params=pltpu.CompilerParams(dimension_semantics=("parallel",)),
    )(q, k, v, temp_c)


def _dwconv_kernel(x_ref, w_ref, b_ref, r_ref, o_ref):
    xp = x_ref[0]                       # (H+2, W+2, C)
    H, W = o_ref.shape[1], o_ref.shape[2]
    acc = r_ref[0] + b_ref[...]         # residual + bias
    for dx in range(3):
        col = xp[:, dx:dx + W, :]       # one sublane shift per dx (3 instead of 9)
        for dy in range(3):
            acc = acc + col[dy:dy + H] * w_ref[dy * 3 + dx, :][None, None, :]
    o_ref[0] = acc


@jax.jit
def dwconv3x3_add(x, w9, b, residual):
    """residual + depthwise 3x3 conv(x) (padding=1, groups=C); grid over batch."""
    B, H, W, C = x.shape
    xp = jnp.pad(x, ((0, 0), (1, 1), (1, 1), (0, 0)))
    return pl.pallas_call(
        _dwconv_kernel,
        out_shape=jax.ShapeDtypeStruct((B, H, W, C), jnp.float32),
        grid=(B,),
        in_specs=[
            pl.BlockSpec((1, H + 2, W + 2, C), lambda i: (i, 0, 0, 0)),
            pl.BlockSpec((9, C), lambda i: (0, 0)),
            pl.BlockSpec((1, C), lambda i: (0, 0)),
            pl.BlockSpec((1, H, W, C), lambda i: (i, 0, 0, 0)),
        ],
        out_specs=pl.BlockSpec((1, H, W, C), lambda i: (i, 0, 0, 0)),
        compiler_params=pltpu.CompilerParams(dimension_semantics=("parallel",)),
    )(xp, w9, b.reshape(1, C), residual)


# ----------------------------------------------------------------------------
# Glue ops (plain JAX): im2col, pooling, upsampling, FFT
# ----------------------------------------------------------------------------
def im2col(x, k, stride, padding):
    B, H, W, C = x.shape
    xp = jnp.pad(x, ((0, 0), (padding, padding), (padding, padding), (0, 0)))
    Ho = (H + 2 * padding - k) // stride + 1
    Wo = (W + 2 * padding - k) // stride + 1
    cols = []
    for dy in range(k):
        for dx in range(k):
            cols.append(xp[:, dy:dy + stride * Ho:stride, dx:dx + stride * Wo:stride, :])
    return jnp.concatenate(cols, axis=-1), Ho, Wo


def conv2d(x, p, k, stride=1, padding=0, activation="none", residual=None):
    B, H, W, C = x.shape
    xb = x.astype(jnp.bfloat16)          # bf16 im2col -> half the HBM traffic
    if k == 1:
        cols, Ho, Wo = xb, H, W
    else:
        cols, Ho, Wo = im2col(xb, k, stride, padding)
    cols = cols.reshape(B * Ho * Wo, -1)
    res = None if residual is None else residual.reshape(B * Ho * Wo, -1)
    y = matmul(cols, p["w"], p["b"], activation, residual=res)
    return y.reshape(B, Ho, Wo, -1)


def avgpool2x2(x):
    B, H, W, C = x.shape
    return x.reshape(B, H // 2, 2, W // 2, 2, C).mean(axis=(2, 4))


def upsample_bilinear_2x(x):
    """nn.UpsamplingBilinear2d(scale_factor=2) == bilinear, align_corners=True."""
    B, H, W, C = x.shape

    def idx(n_in):
        n_out = 2 * n_in
        if n_in == 1:
            z = jnp.zeros((n_out,), jnp.int32)
            return z, z, jnp.zeros((n_out,), jnp.float32)
        pos = jnp.arange(n_out, dtype=jnp.float32) * (n_in - 1) / (n_out - 1)
        lo = jnp.clip(jnp.floor(pos), 0, n_in - 2).astype(jnp.int32)
        frac = pos - lo.astype(jnp.float32)
        return lo, lo + 1, frac

    y0, y1, fy = idx(H)
    x0, x1, fx = idx(W)
    fy = fy[None, :, None, None]
    fx = fx[None, None, :, None]
    gather = lambda yi, xi: x[:, yi][:, :, xi]
    top = gather(y0, x0) * (1.0 - fx) + gather(y0, x1) * fx
    bot = gather(y1, x0) * (1.0 - fx) + gather(y1, x1) * fx
    return top * (1.0 - fy) + bot * fy


@jax.jit
def spectral_transform(x, p):
    # TODO(synk): SpectralTransform is not defined in the provided source; this follows
    # the standard FFC reference (stride-2 avgpool, conv1x1+BN+ReLU, FourierUnit with
    # ortho rfft2 -> conv1x1+BN+ReLU on [real;imag] channels -> irfft2, residual,
    # conv1x1), enable_lfu=False.  FFTs use jnp.fft (no Pallas FFT primitive).
    x = avgpool2x2(x)
    x = conv2d(x, p["conv1"], 1, activation="relu")
    B, H, W, C = x.shape
    f = jnp.fft.rfft2(x, axes=(1, 2), norm="ortho")
    fr = jnp.concatenate([jnp.real(f), jnp.imag(f)], axis=-1).astype(jnp.float32)
    fr = conv2d(fr, p["fu"], 1, activation="relu")
    fc = lax.complex(fr[..., :C], fr[..., C:])
    y = jnp.fft.irfft2(fc, s=(H, W), axes=(1, 2), norm="ortho").astype(jnp.float32)
    return conv2d(x + y, p["conv2"], 1)


def channel_layernorm(x, p):
    B, H, W, C = x.shape
    return layernorm(x.reshape(B * H * W, C), p["g"], p["b"]).reshape(B, H, W, C)


# ----------------------------------------------------------------------------
# Model forward
# ----------------------------------------------------------------------------
def fourier_attention(y, x_res, p, heads=HEADS):
    """FourierAttention(LN(x)) with the encoder residual x_res and RPE fused in."""
    B, H, W, E = y.shape
    half = E // 2
    y1, y2 = y[..., :half], y[..., half:]
    # fused q/k/v 3x3 conv: im2col read once, lane-dense 3*half output
    qkv = conv2d(y1, p["qkv"], 3, 1, 1)
    q_l, k_l, v_l = jnp.split(qkv, 3, axis=-1)
    # fused k2/v2 stride-2 3x3 conv
    kv2 = conv2d(y2, p["kv2"], 3, 2, 1)
    k_h, v_h = jnp.split(kv2, 2, axis=-1)
    q_h = spectral_transform(y2, p["inv_q"])         # outer BN folded into conv2

    D = half // heads
    temp_c = jnp.repeat(p["temperature"], D).reshape(1, half)

    Tl = H * W
    a_l = xca_attention(q_l.reshape(B, Tl, half), k_l.reshape(B, Tl, half),
                        v_l.reshape(B, Tl, half), temp_c, heads=heads)
    Th = (H // 2) * (W // 2)
    a_h = xca_attention(q_h.reshape(B, Th, half), k_h.reshape(B, Th, half),
                        v_h.reshape(B, Th, half), temp_c, heads=heads)
    a_l = a_l.reshape(B, H, W, half)
    a_h = upsample_bilinear_2x(a_h.reshape(B, H // 2, W // 2, half))
    attn = jnp.concatenate([a_h, a_l], axis=-1)      # cat([attn_h, attn_l], dim=1)
    # x_res + rpe(y) in the dwconv epilogue, then + conv(attn) in the matmul
    # epilogue -> no standalone residual adds.
    d = dwconv3x3_add(y, p["rpe"]["w"], p["rpe"]["b"], x_res)
    return conv2d(attn, p["conv"], 1, residual=d)


@jax.jit
def fourier_encoder(x, p):
    x = fourier_attention(channel_layernorm(x, p["ln1"]), x, p["attn"])
    h = conv2d(channel_layernorm(x, p["ln2"]), p["fc1"], 1, activation="mish")
    return conv2d(h, p["fc2"], 1, residual=x)        # residual fused into fc2


def fourier_former_forward(params, x_nchw):
    x = jnp.transpose(x_nchw.astype(jnp.float32), (0, 2, 3, 1))   # NCHW -> NHWC
    for stage in range(4):
        for st in params["patch_embed"][stage]:
            x = spectral_transform(x, st)
        for blk in params["blocks"][stage]:
            x = fourier_encoder(x, blk)
    feat = jnp.mean(x, axis=(1, 2))                               # x.mean([2, 3])
    logits = matmul(feat, params["proj"]["w"], params["proj"]["b"])
    return jax.nn.softmax(logits, axis=1)


# ----------------------------------------------------------------------------
# Deterministic parameter construction (synthetic weights, no checkpoint)
# ----------------------------------------------------------------------------
class ParamGen:
    def __init__(self, seed):
        self.key = jax.random.PRNGKey(seed)

    def take(self, shape, scale):
        self.key, sub = jax.random.split(self.key)
        return scale * jax.random.normal(sub, shape, jnp.float32)


def fused_conv_p(pg, cin, couts, k, bn=False):
    """One or more convs on the same input, concatenated along the output axis
    so they run as a single matmul.  Eval-mode BN folded in when bn=True."""
    ws, bs = [], []
    for cout in couts:
        w = pg.take((k, k, cin, cout), 1.0 / math.sqrt(k * k * cin))
        b = pg.take((cout,), 0.01)
        if bn:
            w = w * BN_SCALE
            b = b * BN_SCALE
        ws.append(w.reshape(k * k * cin, cout))
        bs.append(b)
    return {"w": jnp.concatenate(ws, axis=1).astype(jnp.bfloat16),
            "b": jnp.concatenate(bs)}


def conv_p(pg, cin, cout, k, bn=False):
    return fused_conv_p(pg, cin, [cout], k, bn)


def st_p(pg, cin, cout, outer_bn=False):
    c2 = cout // 2
    return {
        "conv1": conv_p(pg, cin, c2, 1, bn=True),
        "fu": conv_p(pg, 2 * c2, 2 * c2, 1, bn=True),
        "conv2": conv_p(pg, c2, cout, 1, bn=outer_bn),
    }


def encoder_p(pg, dim, heads=HEADS):
    half = dim // 2
    attn = {
        "qkv": fused_conv_p(pg, half, [half, half, half], 3, bn=True),   # q | k | v
        "kv2": fused_conv_p(pg, half, [half, half], 3, bn=True),         # k2 | v2
        "inv_q": st_p(pg, half, half, outer_bn=True),
        "conv": conv_p(pg, dim, dim, 1),
        "rpe": {"w": pg.take((3, 3, dim), 1.0 / 3.0).reshape(9, dim),
                "b": pg.take((dim,), 0.01)},
        "temperature": jnp.ones((heads,), jnp.float32),
    }
    return {
        "ln1": {"g": jnp.ones((dim,), jnp.float32), "b": jnp.zeros((dim,), jnp.float32)},
        "ln2": {"g": jnp.ones((dim,), jnp.float32), "b": jnp.zeros((dim,), jnp.float32)},
        "attn": attn,
        "fc1": conv_p(pg, dim, 4 * dim, 1),
        "fc2": conv_p(pg, 4 * dim, dim, 1),
    }


def build_params(seed=1):
    pg = ParamGen(seed)
    dims = [96, 192, 384, 512]
    nblocks = [2, 2, 8, 2]
    return {
        "patch_embed": [
            [st_p(pg, 3, dims[0] // 2), st_p(pg, dims[0] // 2, dims[0])],  # inv_second
            [st_p(pg, dims[0], dims[1])],                                  # inv_first
            [st_p(pg, dims[1], dims[2])],
            [st_p(pg, dims[2], dims[3])],
        ],
        "blocks": [[encoder_p(pg, dims[i]) for _ in range(nblocks[i])] for i in range(4)],
        "proj": {"w": pg.take((dims[-1], 2), 1.0 / math.sqrt(dims[-1])).astype(jnp.bfloat16),
                 "b": jnp.zeros((2,), jnp.float32)},
    }


if __name__ == "__main__":
    params = build_params(seed=1)
    x = jax.random.normal(jax.random.PRNGKey(0), (2, 3, 128, 128), jnp.float32)
    out = fourier_former_forward(params, x)
    out = jax.block_until_ready(out)
    assert out.shape == (2, 2)
    assert bool(jnp.all(jnp.isfinite(out)))
    assert bool(jnp.allclose(jnp.sum(out, axis=1), 1.0, atol=1e-4))
    print("KERNEL_OK")
</pallas_src>

<mosaic_0001>
module attributes {stable_mosaic.version = 11 : i64} {
  func.func @_matmul_kernel(%arg0: i32, %arg1: i32, %arg2: memref<512x3xbf16, #tpu.memory_space<vmem>>, %arg3: memref<3x24xbf16, #tpu.memory_space<vmem>>, %arg4: memref<1x24xf32, #tpu.memory_space<vmem>>, %arg5: memref<512x24xf32, #tpu.memory_space<vmem>>) attributes {dimension_semantics = [#tpu.dimension_semantics<parallel>, #tpu.dimension_semantics<parallel>], iteration_bounds = array<i64: 1, 16>, scalar_prefetch = 0 : i64, scratch_operands = 0 : i64, tpu.core_type = #tpu.core_type<tc>, window_params = [{transform_indices = @transform_0, window_bounds = array<i64: 512, 3>}, {transform_indices = @transform_1, window_bounds = array<i64: 3, 24>}, {transform_indices = @transform_2, window_bounds = array<i64: 1, 24>}, {transform_indices = @transform_3, window_bounds = array<i64: 512, 24>}]} {
    %c0 = arith.constant 0 : index
    %c0_0 = arith.constant 0 : index
    %0 = vector.load %arg2[%c0, %c0_0] : memref<512x3xbf16, #tpu.memory_space<vmem>>, vector<512x3xbf16>
    %c0_1 = arith.constant 0 : index
    %c0_2 = arith.constant 0 : index
    %1 = vector.load %arg3[%c0_1, %c0_2] : memref<3x24xbf16, #tpu.memory_space<vmem>>, vector<3x24xbf16>
    %cst = arith.constant dense<0.000000e+00> : vector<512x24xf32>
    %2 = tpu.matmul %0, %1, %cst {dimension_numbers = #tpu.dot_dimension_numbers<[1], [0], [0], [1], [0, 0, 1, 1], [], []>} : vector<512x3xbf16>, vector<3x24xbf16>, vector<512x24xf32> -> vector<512x24xf32>
    %c0_3 = arith.constant 0 : index
    %c0_4 = arith.constant 0 : index
    %3 = vector.load %arg4[%c0_3, %c0_4] : memref<1x24xf32, #tpu.memory_space<vmem>>, vector<1x24xf32>
    %4 = vector.broadcast %3 : vector<1x24xf32> to vector<512x24xf32>
    %5 = arith.addf %2, %4 : vector<512x24xf32>
    %cst_5 = arith.constant 0.000000e+00 : f32
    %6 = vector.broadcast %cst_5 : f32 to vector<512x24xf32>
    %7 = arith.maximumf %5, %6 : vector<512x24xf32>
    %c0_6 = arith.constant 0 : index
    %c0_7 = arith.constant 0 : index
    %8 = vector.load %arg5[%c0_6, %c0_7] : memref<512x24xf32, #tpu.memory_space<vmem>>, vector<512x24xf32>
    tpu.vector_store %arg5[%c0_6, %c0_7], %7 {strides = array<i32>} : memref<512x24xf32, #tpu.memory_space<vmem>>, vector<512x24xf32>,
    return
  }
  func.func @transform_0(%arg0: i32, %arg1: i32) -> (i32, i32) {
    %c0_i32 = arith.constant 0 : i32
    %c0_i32_0 = arith.constant 0 : i32
    return %arg1, %c0_i32 : i32, i32
  }
  func.func @transform_1(%arg0: i32, %arg1: i32) -> (i32, i32) {
    %c0_i32 = arith.constant 0 : i32
    %c0_i32_0 = arith.constant 0 : i32
    return %c0_i32, %arg0 : i32, i32
  }
  func.func @transform_2(%arg0: i32, %arg1: i32) -> (i32, i32) {
    %c0_i32 = arith.constant 0 : i32
    %c0_i32_0 = arith.constant 0 : i32
    return %c0_i32, %arg0 : i32, i32
  }
  func.func @transform_3(%arg0: i32, %arg1: i32) -> (i32, i32) {
    %c0_i32 = arith.constant 0 : i32
    return %arg1, %arg0 : i32, i32
  }
}

</mosaic_0001>

<bundles_post_ra>
// kernel: matmul.1
= control target key start
LH: loop header
LB: loop body
LE: loop exit
PB: predicated region body
PF: predicated region fallthrough
CT: control target
= control target key end

     0   :  { %8 = vsyncpa [#allocation3], 0  ;;  %s1839_s0 = inlined_call_operand.vmem [shape: bf16[8192,3], index: 0, kind: input, shape index: {}]   ;;  %s1840_s1 = inlined_call_operand.hbm [shape: bf16[3,24], index: 1, kind: input, shape index: {}]   ;;  %s1841_s2 = inlined_call_operand.hbm [shape: f32[1,24], index: 2, kind: input, shape index: {}]   ;;  %s1842_s3 = inlined_call_operand.vmem [shape: f32[8192,24], index: 3, kind: output, shape index: {}]  }
   0x1   :  { %9 = vsyncpa [#allocation5], 0  ;;  %s1460_s12 = smov 0   ;;  %s1462_s13 = smov 0  }
   0x2   :  { %s1464_s14 = smov 0  }
   0x3 LB: > { %s1090_s15 = sadd.s32 4294967295, %s1435_s14   ;;  %s24_s16 = sadd.s32 1, %s1431_s13  ;;  %s1435_s14 = sphi %s1464_s14, %s15_s14   ;;  %s1431_s13 = sphi %s1462_s13, %s1852_s13   ;;  %s1427_s12 = sphi %s1460_s12, %s1851_s12  }
   0x4   : > { %p25_p0 = scmp.ge.s32.totalorder %s24_s16, 16  ;;  %p1092_p1 = scmp.ge.s32.totalorder %s1435_s14, 1 }
   0x5   : > { %p138_p2 = scmp.lt.s32.totalorder %s1435_s14, 17  ;;  %p1485_p4 = scmp.eq.s32.totalorder %s1090_s15, 0 }
   0x6   : > { %s1854_s16 = smov (%p25_p0, %s24_s16), 0  ;;  %s1437_s19 = smov [#allocation2]  }
   0x7   : > { %p1481_p3 = pnand %p1092_p1, %p138_p2  ;;  %s153_s20 = sshll.u32 %s1437_s19, 4  ;;  %s154_s20 = int_to_ptr.vmem [resolvable:$true] %s153_s20 }
   0x8   : > { %s1847_s18 = scalar_select %p1485_p4, 1, 0 }
   0x9   : > { %s1846_s17 = scalar_select %p1481_p3, 1, 0 }
   0xa   : > { %p1279_p5 = pneg %p1481_p3  ;;  %s1438_s21 = smov [#allocation4]  }
   0xb   : > { %s166_s22 = sshll.u32 %s1438_s21, 4  ;;  %s1349_s26 = scalar_lea.hbm %s1840_s1, 32  ;;  %s1497_s22 = int_to_ptr.vmem [resolvable:$true] %s166_s22 }
   0xc   : > { %p1493_p6 = pnand %p1485_p4, %p1279_p5  ;;  %p1350_p7 = scmp.ne.s32.totalorder %s1840_s1, %s1349_s26 }
   0xd   : > { %p1356_p11 = scmp.lt.u32.totalorder %s1349_s26, %s1840_s1 }
   0xe   : > { %p1351_p8 = pneg %p1493_p6 }
  0x10   : > { %p1352_p9 = pnand %p1351_p8, %p1350_p7 }
  0x12   : > { %p1353_p10 = pneg %p1352_p9 }
  0x14   : > { %p1358_p12 = pnand %p1356_p11, %p1353_p10 }
  0x16   : > { %1361 = shalt.err (!%p1358_p12)
}
  0x17   : > { %s1362_s4 = scalar_lea.vmem %s154_s20, 32  ;;  %p1370_p2 = scmp.lt.s32.totalorder %s154_s20, %s154_s20 }
  0x18   : > { %p1363_p13 = scmp.ne.s32.totalorder %s154_s20, %s1362_s4  ;;  %p1371_p5 = scmp.lt.s32.totalorder %s1362_s4, %s1362_s4 }
  0x1a   : > { %p1365_p0 = pnand %p1363_p13, %p1351_p8  ;;  %p1372_p4 = por %p1371_p5, %p1370_p2 }
  0x1c   : > { %p1366_p1 = pneg %p1365_p0 }
  0x1e   : > { %p1373_p3 = pnand %p1372_p4, %p1366_p1 }
  0x20   : > { %1376 = shalt.err (!%p1373_p3)
}
  0x21   : > { %1282 = dma.hbm_to_vmem [thread:$0]  (!%p1493_p6), %s1840_s1, 32, %s154_s20, [#allocation3]  }
  0x22   : > { %s1377_s9 = scalar_lea.hbm %s1841_s2, 16 }
  0x23   : > { %p1378_p7 = scmp.ne.s32.totalorder %s1841_s2, %s1377_s9  ;;  %p1384_p3 = scmp.lt.u32.totalorder %s1377_s9, %s1841_s2 }
  0x25   : > { %p1380_p9 = pnand %p1378_p7, %p1351_p8 }
  0x27   : > { %p1381_p4 = pneg %p1380_p9 }
  0x29   : > { %p1386_p10 = pnand %p1384_p3, %p1381_p4 }
  0x2b   : > { %1389 = shalt.err (!%p1386_p10)
}
  0x2c   : > { %s1390_s20 = scalar_lea.vmem %s1497_s22, 16  ;;  %s1397_s21 = scalar_lea.vmem %s1497_s22, 32 }
  0x2d   : > { %p1391_p11 = scmp.ne.s32.totalorder %s1497_s22, %s1390_s20  ;;  %p1398_p0 = scmp.lt.s32.totalorder %s1497_s22, %s1497_s22 }
  0x2e   : > { %p1399_p1 = scmp.lt.s32.totalorder %s1397_s21, %s1390_s20 }
  0x2f   : > { %p1393_p12 = pnand %p1391_p11, %p1351_p8 }
  0x30   : > { %p1400_p2 = por %p1399_p1, %p1398_p0 }
  0x31   : > { %p1394_p13 = pneg %p1393_p12 }
  0x33   : > { %p1401_p5 = pnand %p1400_p2, %p1394_p13 }
  0x35   : > { %1404 = shalt.err (!%p1401_p5)
}
  0x36   : > { %1285 = dma.hbm_to_vmem [thread:$0]  (!%p1493_p6), %s1841_s2, 16, %s1497_s22, [#allocation5]  }
  0x37   : > { %p1849_p7 = scmp.ne.s32.totalorder %s1846_s17, 0 }
  0x38   : > { %p1850_p8 = scmp.ne.s32.totalorder (!%p1849_p7), %s1847_s18, 0 }
  0x39   : > { %188 = sbr.rel (%p1849_p7) target bundleno = 352 (0x160), region = 32 }
  0x40   : > { %1418 = dma.done.wait (%p1850_p8), [#allocation3], 32  }
  0x41   : > { %1420 = vsyncadd (%p1850_p8), [#allocation3], 4294967264 }
  0x42   : > { %1422 = dma.done.wait (%p1850_p8), [#allocation5], 16  }
  0x43   : > { %1424 = vsyncadd (%p1850_p8), [#allocation5], 4294967280  ;;  %vm564_vm0 = vcmask 1040384   ;;  %s1099_s23 = sshll.u32 %s1427_s12, 6  ;;  %vm565_vm1 = vcmask 1041408   ;;  %v1439_v0 = vmov 65535  }
  0x44   : > { %p220_p9 = scmp.lt.s32.totalorder %s1099_s23, 1023  ;;  %v566_v1 = vsel %vm564_vm0, 4294967295, %v1439_v0  ;;  %v299_v3 = vld [vmem:[#allocation2] sm:$0x3]  ;;  %vm467_vm2 = vcmask 23552   ;;  %vm924_vm3 = vcmask 195584  }
  0x45   : > { %v567_v2 = vsel %vm565_vm1, %v566_v1, 0  ;;  %v1630_v37 = vld [vmem:[#allocation4] ss:$0 sm:$0xff] }
  0x46   : > { %s1856_s23 = smov (!%p220_p9, %s1099_s23), 1023  ;;  %v569_v4 = vand.u32 %v567_v2, %v299_v3 }
  0x47   : > { %s1100_s17 = sshll.u32 %s1856_s23, 2  ;;  %s1102_s12 = sshll.u32 %s1856_s23, 3 }
  0x48   : > { %s1564_s27 = scalar_lea.vmem %s1839_s0, %s1100_s17  ;;  %1203 = vmatprep.subr.bf16.mxu0 %v569_v4  ;;  %1269 = vmatprep.subr.bf16.mxu1 %v569_v4  ;;  %s1638_s29 = scalar_lea.vmem %s1842_s3, %s1102_s12 }
  0x49   : > { %v1317_v5 = vld [vmem:[%s1564_s27] sm:$0xff]   ;;  %v1319_v7 = vld [vmem:[%s1564_s27 + $0x8] sm:$0xff]   ;;  %1204 = vmatpush3.bf16.msra.mxu0 %v569_v4  ;;  %1270 = vmatpush3.bf16.msra.mxu1 %v569_v4  ;;  %v1321_v9 = vld [vmem:[%s1564_s27 + $0x10] sm:$0xff]  }
  0x4a   : > { %v1318_v6 = vld [vmem:[%s1564_s27 + $0x80] sm:$0xff]   ;;  %v1320_v8 = vld [vmem:[%s1564_s27 + $0x88] sm:$0xff]   ;;  %1205 = vmatprep.mubr.msk.bf16.mxu0 %vm467_vm2, %v1317_v5  ;;  %v1322_v10 = vld [vmem:[%s1564_s27 + $0x90] sm:$0xff]  }
  0x4b   : > { %1237 = vmatprep.mubr.msk.bf16.mxu1 %vm467_vm2, %v1318_v6  ;;  %v1323_v11 = vld [vmem:[%s1564_s27 + $0x18] sm:$0xff]   ;;  %v1325_v13 = vld [vmem:[%s1564_s27 + $0x20] sm:$0xff]   ;;  %v1327_v15 = vld [vmem:[%s1564_s27 + $0x28] sm:$0xff]  }
  0x4c   : > { %1206 = vmatmul.mubr.msk.bf16.vlgmr.msra.gmra.mrb[0].mxu0 %vm467_vm2, %v1319_v7  ;;  %1238 = vmatmul.mubr.msk.bf16.vlgmr.msra.gmra.mrb[0].mxu1 %vm467_vm2, %v1320_v8  ;;  %v1324_v12 = vld [vmem:[%s1564_s27 + $0x98] sm:$0xff]   ;;  %v1326_v14 = vld [vmem:[%s1564_s27 + $0xa0] sm:$0xff]   ;;  %v1328_v16 = vld [vmem:[%s1564_s27 + $0xa8] sm:$0xff]  }
  0x4d   : > { %1209 = vmatprep.mubr.msk.bf16.mxu0 %vm467_vm2, %v1321_v9  ;;  %1241 = vmatprep.mubr.msk.bf16.mxu1 %vm467_vm2, %v1322_v10  ;;  %v1329_v17 = vld [vmem:[%s1564_s27 + $0x30] sm:$0xff]   ;;  %v1331_v19 = vld [vmem:[%s1564_s27 + $0x38] sm:$0xff]   ;;  %v1333_v21 = vld [vmem:[%s1564_s27 + $0x40] sm:$0xff]  }
  0x4e   : > { %v1330_v18 = vld [vmem:[%s1564_s27 + $0xb0] sm:$0xff]   ;;  %v1332_v20 = vld [vmem:[%s1564_s27 + $0xb8] sm:$0xff]   ;;  %v1334_v22 = vld [vmem:[%s1564_s27 + $0xc0] sm:$0xff]  }
  0x4f   : > { %v1335_v23 = vld [vmem:[%s1564_s27 + $0x48] sm:$0xff]   ;;  %v1337_v25 = vld [vmem:[%s1564_s27 + $0x50] sm:$0xff]   ;;  %v1339_v27 = vld [vmem:[%s1564_s27 + $0x58] sm:$0xff]  }
  0x50   : > { %v1336_v24 = vld [vmem:[%s1564_s27 + $0xc8] sm:$0xff]   ;;  %v1338_v26 = vld [vmem:[%s1564_s27 + $0xd0] sm:$0xff]   ;;  %v1340_v28 = vld [vmem:[%s1564_s27 + $0xd8] sm:$0xff]  }
  0x51   : > { %v1341_v29 = vld [vmem:[%s1564_s27 + $0x60] sm:$0xff]   ;;  %v1343_v31 = vld [vmem:[%s1564_s27 + $0x68] sm:$0xff]   ;;  %v1345_v33 = vld [vmem:[%s1564_s27 + $0x70] sm:$0xff]  }
  0x52   : > { %v1342_v30 = vld [vmem:[%s1564_s27 + $0xe0] sm:$0xff]   ;;  %v1344_v32 = vld [vmem:[%s1564_s27 + $0xe8] sm:$0xff]   ;;  %v1346_v34 = vld [vmem:[%s1564_s27 + $0xf0] sm:$0xff]  }
  0x53   : > { %v1347_v35 = vld [vmem:[%s1564_s27 + $0x78] sm:$0xff]  }
  0x54   : > { %1210 = vmatmul.mubr.msk.bf16.gmra.mrb[4].mxu0 %vm467_vm2, %v1323_v11  ;;  %1242 = vmatmul.mubr.msk.bf16.gmra.mrb[4].mxu1 %vm467_vm2, %v1324_v12  ;;  %v1348_v36 = vld [vmem:[%s1564_s27 + $0xf8] sm:$0xff]  }
  0x55   : > { %1213 = vmatprep.mubr.msk.bf16.mxu0 %vm467_vm2, %v1325_v13  ;;  %1245 = vmatprep.mubr.msk.bf16.mxu1 %vm467_vm2, %v1326_v14 }
  0x5c   : > { %1214 = vmatmul.mubr.msk.bf16.gmra.mrb[8].mxu0 %vm467_vm2, %v1327_v15  ;;  %1246 = vmatmul.mubr.msk.bf16.gmra.mrb[8].mxu1 %vm467_vm2, %v1328_v16 }
  0x5d   : > { %1217 = vmatprep.mubr.msk.bf16.mxu0 %vm467_vm2, %v1329_v17  ;;  %1249 = vmatprep.mubr.msk.bf16.mxu1 %vm467_vm2, %v1330_v18 }
  0x64   : > { %1218 = vmatmul.mubr.msk.bf16.gmra.mrb[12].mxu0 %vm467_vm2, %v1331_v19  ;;  %1250 = vmatmul.mubr.msk.bf16.gmra.mrb[12].mxu1 %vm467_vm2, %v1332_v20 }
  0x65   : > { %1221 = vmatprep.mubr.msk.bf16.mxu0 %vm467_vm2, %v1333_v21  ;;  %1253 = vmatprep.mubr.msk.bf16.mxu1 %vm467_vm2, %v1334_v22 }
  0x6c   : > { %1222 = vmatmul.mubr.msk.bf16.gmra.mrb[16].mxu0 %vm467_vm2, %v1335_v23  ;;  %1254 = vmatmul.mubr.msk.bf16.gmra.mrb[16].mxu1 %vm467_vm2, %v1336_v24 }
  0x6d   : > { %1225 = vmatprep.mubr.msk.bf16.mxu0 %vm467_vm2, %v1337_v25  ;;  %1257 = vmatprep.mubr.msk.bf16.mxu1 %vm467_vm2, %v1338_v26 }
  0x74   : > { %1226 = vmatmul.mubr.msk.bf16.gmra.mrb[20].mxu0 %vm467_vm2, %v1339_v27  ;;  %1258 = vmatmul.mubr.msk.bf16.gmra.mrb[20].mxu1 %vm467_vm2, %v1340_v28 }
  0x75   : > { %1229 = vmatprep.mubr.msk.bf16.mxu0 %vm467_vm2, %v1341_v29  ;;  %1261 = vmatprep.mubr.msk.bf16.mxu1 %vm467_vm2, %v1342_v30 }
  0x7c   : > { %1230 = vmatmul.mubr.msk.bf16.gmra.mrb[24].mxu0 %vm467_vm2, %v1343_v31  ;;  %1262 = vmatmul.mubr.msk.bf16.gmra.mrb[24].mxu1 %vm467_vm2, %v1344_v32 }
  0x7d   : > { %1233 = vmatprep.mubr.msk.bf16.mxu0 %vm467_vm2, %v1345_v33  ;;  %1265 = vmatprep.mubr.msk.bf16.mxu1 %vm467_vm2, %v1346_v34 }
  0x84   : > { %1234 = vmatmul.mubr.msk.bf16.gmra.mrb[28].mxu0 %vm467_vm2, %v1347_v35  ;;  %1266 = vmatmul.mubr.msk.bf16.gmra.mrb[28].mxu1 %vm467_vm2, %v1348_v36 }
 0x11f   : > { %v1207_v38 = vpop.f32.mrb[0].mxu0  ;;  %v1239_v39 = vpop.f32.mrb[0].mxu1 }
 0x120   : > { %v614_v40 = vadd.f32 %v1207_v38, %v1630_v37  ;;  %v742_v41 = vadd.f32 %v1239_v39, %v1630_v37  ;;  %v605_v42 = vpop.f32.mrb[1].mxu0  ;;  %v733_v43 = vpop.f32.mrb[1].mxu1 }
 0x121   : > { %v606_v44 = vadd.f32 %v1630_v37, %v605_v42  ;;  %v734_v45 = vadd.f32 %v1630_v37, %v733_v43  ;;  %v1208_v46 = vpop.f32.mrb[2].mxu0  ;;  %v1240_v47 = vpop.f32.mrb[2].mxu1 }
 0x122   : > { %v862_v48 = vmax.f32 %v614_v40, 0.0  ;;  %v894_v49 = vmax.f32 %v742_v41, 0.0  ;;  %v617_v50 = vadd.f32 %v1208_v46, %v1630_v37  ;;  %v745_v51 = vadd.f32 %v1240_v47, %v1630_v37  ;;  %v608_v52 = vpop.f32.mrb[3].mxu0  ;;  %v736_v53 = vpop.f32.mrb[3].mxu1 }
 0x123   : > { %v860_v54 = vmax.f32 %v606_v44, 0.0  ;;  %v892_v55 = vmax.f32 %v734_v45, 0.0  ;;  %v609_v56 = vadd.f32 %v1630_v37, %v608_v52  ;;  %v737_v57 = vadd.f32 %v1630_v37, %v736_v53 }
 0x124   : > { %927 = vst.msk [vmem:[%s1638_s29 + $0x10] sm:$0xff] %vm924_vm3, %v862_v48  ;;  %959 = vst.msk [vmem:[%s1638_s29 + $0x110] sm:$0xff] %vm924_vm3, %v894_v49  ;;  %v863_v58 = vmax.f32 %v617_v50, 0.0  ;;  %v895_v59 = vmax.f32 %v745_v51, 0.0 }
 0x125   : > { %925 = vst.msk [vmem:[%s1638_s29] sm:$0xff] %vm924_vm3, %v860_v54  ;;  %957 = vst.msk [vmem:[%s1638_s29 + $0x100] sm:$0xff] %vm924_vm3, %v892_v55  ;;  %v861_v60 = vmax.f32 %v609_v56, 0.0  ;;  %v893_v61 = vmax.f32 %v737_v57, 0.0 }
 0x126   : > { %928 = vst.msk [vmem:[%s1638_s29 + $0x18] sm:$0xff] %vm924_vm3, %v863_v58  ;;  %960 = vst.msk [vmem:[%s1638_s29 + $0x118] sm:$0xff] %vm924_vm3, %v895_v59 }
 0x127   : > { %926 = vst.msk [vmem:[%s1638_s29 + $0x8] sm:$0xff] %vm924_vm3, %v861_v60  ;;  %958 = vst.msk [vmem:[%s1638_s29 + $0x108] sm:$0xff] %vm924_vm3, %v893_v61  ;;  %v1211_v62 = vpop.f32.mrb[4].mxu0  ;;  %v1243_v63 = vpop.f32.mrb[4].mxu1 }
 0x128   : > { %v630_v0 = vadd.f32 %v1211_v62, %v1630_v37  ;;  %v758_v1 = vadd.f32 %v1243_v63, %v1630_v37  ;;  %v621_v2 = vpop.f32.mrb[5].mxu0  ;;  %v749_v3 = vpop.f32.mrb[5].mxu1 }
 0x129   : > { %v622_v4 = vadd.f32 %v1630_v37, %v621_v2  ;;  %v750_v5 = vadd.f32 %v1630_v37, %v749_v3  ;;  %v1212_v6 = vpop.f32.mrb[6].mxu0  ;;  %v1244_v7 = vpop.f32.mrb[6].mxu1 }
 0x12a   : > { %v866_v8 = vmax.f32 %v630_v0, 0.0  ;;  %v898_v9 = vmax.f32 %v758_v1, 0.0  ;;  %v633_v10 = vadd.f32 %v1212_v6, %v1630_v37  ;;  %v761_v11 = vadd.f32 %v1244_v7, %v1630_v37  ;;  %v624_v12 = vpop.f32.mrb[7].mxu0  ;;  %v752_v13 = vpop.f32.mrb[7].mxu1 }
 0x12b   : > { %v864_v14 = vmax.f32 %v622_v4, 0.0  ;;  %v896_v15 = vmax.f32 %v750_v5, 0.0  ;;  %v625_v16 = vadd.f32 %v1630_v37, %v624_v12  ;;  %v753_v17 = vadd.f32 %v1630_v37, %v752_v13 }
 0x12c   : > { %931 = vst.msk [vmem:[%s1638_s29 + $0x30] sm:$0xff] %vm924_vm3, %v866_v8  ;;  %963 = vst.msk [vmem:[%s1638_s29 + $0x130] sm:$0xff] %vm924_vm3, %v898_v9  ;;  %v867_v18 = vmax.f32 %v633_v10, 0.0  ;;  %v899_v19 = vmax.f32 %v761_v11, 0.0 }
 0x12d   : > { %929 = vst.msk [vmem:[%s1638_s29 + $0x20] sm:$0xff] %vm924_vm3, %v864_v14  ;;  %961 = vst.msk [vmem:[%s1638_s29 + $0x120] sm:$0xff] %vm924_vm3, %v896_v15  ;;  %v865_v20 = vmax.f32 %v625_v16, 0.0  ;;  %v897_v21 = vmax.f32 %v753_v17, 0.0 }
 0x12e   : > { %932 = vst.msk [vmem:[%s1638_s29 + $0x38] sm:$0xff] %vm924_vm3, %v867_v18  ;;  %964 = vst.msk [vmem:[%s1638_s29 + $0x138] sm:$0xff] %vm924_vm3, %v899_v19 }
 0x12f   : > { %930 = vst.msk [vmem:[%s1638_s29 + $0x28] sm:$0xff] %vm924_vm3, %v865_v20  ;;  %962 = vst.msk [vmem:[%s1638_s29 + $0x128] sm:$0xff] %vm924_vm3, %v897_v21  ;;  %v1215_v22 = vpop.f32.mrb[8].mxu0  ;;  %v1247_v23 = vpop.f32.mrb[8].mxu1 }
 0x130   : > { %v646_v24 = vadd.f32 %v1215_v22, %v1630_v37  ;;  %v774_v25 = vadd.f32 %v1247_v23, %v1630_v37  ;;  %v637_v26 = vpop.f32.mrb[9].mxu0  ;;  %v765_v27 = vpop.f32.mrb[9].mxu1 }
 0x131   : > { %v638_v28 = vadd.f32 %v1630_v37, %v637_v26  ;;  %v766_v29 = vadd.f32 %v1630_v37, %v765_v27  ;;  %v1216_v30 = vpop.f32.mrb[10].mxu0  ;;  %v1248_v31 = vpop.f32.mrb[10].mxu1 }
 0x132   : > { %v870_v32 = vmax.f32 %v646_v24, 0.0  ;;  %v902_v33 = vmax.f32 %v774_v25, 0.0  ;;  %v649_v34 = vadd.f32 %v1216_v30, %v1630_v37  ;;  %v777_v35 = vadd.f32 %v1248_v31, %v1630_v37  ;;  %v640_v36 = vpop.f32.mrb[11].mxu0  ;;  %v768_v38 = vpop.f32.mrb[11].mxu1 }
 0x133   : > { %v868_v39 = vmax.f32 %v638_v28, 0.0  ;;  %v900_v40 = vmax.f32 %v766_v29, 0.0  ;;  %v641_v41 = vadd.f32 %v1630_v37, %v640_v36  ;;  %v769_v42 = vadd.f32 %v1630_v37, %v768_v38 }
 0x134   : > { %935 = vst.msk [vmem:[%s1638_s29 + $0x50] sm:$0xff] %vm924_vm3, %v870_v32  ;;  %967 = vst.msk [vmem:[%s1638_s29 + $0x150] sm:$0xff] %vm924_vm3, %v902_v33  ;;  %v871_v43 = vmax.f32 %v649_v34, 0.0  ;;  %v903_v44 = vmax.f32 %v777_v35, 0.0 }
 0x135   : > { %933 = vst.msk [vmem:[%s1638_s29 + $0x40] sm:$0xff] %vm924_vm3, %v868_v39  ;;  %965 = vst.msk [vmem:[%s1638_s29 + $0x140] sm:$0xff] %vm924_vm3, %v900_v40  ;;  %v869_v45 = vmax.f32 %v641_v41, 0.0  ;;  %v901_v46 = vmax.f32 %v769_v42, 0.0 }
 0x136   : > { %936 = vst.msk [vmem:[%s1638_s29 + $0x58] sm:$0xff] %vm924_vm3, %v871_v43  ;;  %968 = vst.msk [vmem:[%s1638_s29 + $0x158] sm:$0xff] %vm924_vm3, %v903_v44 }
 0x137   : > { %934 = vst.msk [vmem:[%s1638_s29 + $0x48] sm:$0xff] %vm924_vm3, %v869_v45  ;;  %966 = vst.msk [vmem:[%s1638_s29 + $0x148] sm:$0xff] %vm924_vm3, %v901_v46  ;;  %v1219_v47 = vpop.f32.mrb[12].mxu0  ;;  %v1251_v48 = vpop.f32.mrb[12].mxu1 }
 0x138   : > { %v662_v49 = vadd.f32 %v1219_v47, %v1630_v37  ;;  %v790_v50 = vadd.f32 %v1251_v48, %v1630_v37  ;;  %v653_v51 = vpop.f32.mrb[13].mxu0  ;;  %v781_v52 = vpop.f32.mrb[13].mxu1 }
 0x139   : > { %v654_v53 = vadd.f32 %v1630_v37, %v653_v51  ;;  %v782_v54 = vadd.f32 %v1630_v37, %v781_v52  ;;  %v1220_v55 = vpop.f32.mrb[14].mxu0  ;;  %v1252_v56 = vpop.f32.mrb[14].mxu1 }
 0x13a   : > { %v874_v57 = vmax.f32 %v662_v49, 0.0  ;;  %v906_v58 = vmax.f32 %v790_v50, 0.0  ;;  %v665_v59 = vadd.f32 %v1220_v55, %v1630_v37  ;;  %v793_v60 = vadd.f32 %v1252_v56, %v1630_v37  ;;  %v656_v61 = vpop.f32.mrb[15].mxu0  ;;  %v784_v62 = vpop.f32.mrb[15].mxu1 }
 0x13b   : > { %v872_v63 = vmax.f32 %v654_v53, 0.0  ;;  %v904_v0 = vmax.f32 %v782_v54, 0.0  ;;  %v657_v1 = vadd.f32 %v1630_v37, %v656_v61  ;;  %v785_v2 = vadd.f32 %v1630_v37, %v784_v62 }
 0x13c   : > { %939 = vst.msk [vmem:[%s1638_s29 + $0x70] sm:$0xff] %vm924_vm3, %v874_v57  ;;  %971 = vst.msk [vmem:[%s1638_s29 + $0x170] sm:$0xff] %vm924_vm3, %v906_v58  ;;  %v875_v3 = vmax.f32 %v665_v59, 0.0  ;;  %v907_v4 = vmax.f32 %v793_v60, 0.0 }
 0x13d   : > { %937 = vst.msk [vmem:[%s1638_s29 + $0x60] sm:$0xff] %vm924_vm3, %v872_v63  ;;  %969 = vst.msk [vmem:[%s1638_s29 + $0x160] sm:$0xff] %vm924_vm3, %v904_v0  ;;  %v873_v5 = vmax.f32 %v657_v1, 0.0  ;;  %v905_v6 = vmax.f32 %v785_v2, 0.0 }
 0x13e   : > { %940 = vst.msk [vmem:[%s1638_s29 + $0x78] sm:$0xff] %vm924_vm3, %v875_v3  ;;  %972 = vst.msk [vmem:[%s1638_s29 + $0x178] sm:$0xff] %vm924_vm3, %v907_v4 }
 0x13f   : > { %938 = vst.msk [vmem:[%s1638_s29 + $0x68] sm:$0xff] %vm924_vm3, %v873_v5  ;;  %970 = vst.msk [vmem:[%s1638_s29 + $0x168] sm:$0xff] %vm924_vm3, %v905_v6  ;;  %v1223_v7 = vpop.f32.mrb[16].mxu0  ;;  %v1255_v8 = vpop.f32.mrb[16].mxu1 }
 0x140   : > { %v678_v9 = vadd.f32 %v1223_v7, %v1630_v37  ;;  %v806_v10 = vadd.f32 %v1255_v8, %v1630_v37  ;;  %v669_v11 = vpop.f32.mrb[17].mxu0  ;;  %v797_v12 = vpop.f32.mrb[17].mxu1 }
 0x141   : > { %v670_v13 = vadd.f32 %v1630_v37, %v669_v11  ;;  %v798_v14 = vadd.f32 %v1630_v37, %v797_v12  ;;  %v1224_v15 = vpop.f32.mrb[18].mxu0  ;;  %v1256_v16 = vpop.f32.mrb[18].mxu1 }
 0x142   : > { %v878_v17 = vmax.f32 %v678_v9, 0.0  ;;  %v910_v18 = vmax.f32 %v806_v10, 0.0  ;;  %v681_v19 = vadd.f32 %v1224_v15, %v1630_v37  ;;  %v809_v20 = vadd.f32 %v1256_v16, %v1630_v37  ;;  %v672_v21 = vpop.f32.mrb[19].mxu0  ;;  %v800_v22 = vpop.f32.mrb[19].mxu1 }
 0x143   : > { %v876_v23 = vmax.f32 %v670_v13, 0.0  ;;  %v908_v24 = vmax.f32 %v798_v14, 0.0  ;;  %v673_v25 = vadd.f32 %v1630_v37, %v672_v21  ;;  %v801_v26 = vadd.f32 %v1630_v37, %v800_v22 }
 0x144   : > { %943 = vst.msk [vmem:[%s1638_s29 + $0x90] sm:$0xff] %vm924_vm3, %v878_v17  ;;  %975 = vst.msk [vmem:[%s1638_s29 + $0x190] sm:$0xff] %vm924_vm3, %v910_v18  ;;  %v879_v27 = vmax.f32 %v681_v19, 0.0  ;;  %v911_v28 = vmax.f32 %v809_v20, 0.0 }
 0x145   : > { %941 = vst.msk [vmem:[%s1638_s29 + $0x80] sm:$0xff] %vm924_vm3, %v876_v23  ;;  %973 = vst.msk [vmem:[%s1638_s29 + $0x180] sm:$0xff] %vm924_vm3, %v908_v24  ;;  %v877_v29 = vmax.f32 %v673_v25, 0.0  ;;  %v909_v30 = vmax.f32 %v801_v26, 0.0 }
 0x146   : > { %944 = vst.msk [vmem:[%s1638_s29 + $0x98] sm:$0xff] %vm924_vm3, %v879_v27  ;;  %976 = vst.msk [vmem:[%s1638_s29 + $0x198] sm:$0xff] %vm924_vm3, %v911_v28 }
 0x147   : > { %942 = vst.msk [vmem:[%s1638_s29 + $0x88] sm:$0xff] %vm924_vm3, %v877_v29  ;;  %974 = vst.msk [vmem:[%s1638_s29 + $0x188] sm:$0xff] %vm924_vm3, %v909_v30  ;;  %v1227_v31 = vpop.f32.mrb[20].mxu0  ;;  %v1259_v32 = vpop.f32.mrb[20].mxu1 }
 0x148   : > { %v694_v33 = vadd.f32 %v1227_v31, %v1630_v37  ;;  %v822_v34 = vadd.f32 %v1259_v32, %v1630_v37  ;;  %v685_v35 = vpop.f32.mrb[21].mxu0  ;;  %v813_v36 = vpop.f32.mrb[21].mxu1 }
 0x149   : > { %v686_v38 = vadd.f32 %v1630_v37, %v685_v35  ;;  %v814_v39 = vadd.f32 %v1630_v37, %v813_v36  ;;  %v1228_v40 = vpop.f32.mrb[22].mxu0  ;;  %v1260_v41 = vpop.f32.mrb[22].mxu1 }
 0x14a   : > { %v882_v42 = vmax.f32 %v694_v33, 0.0  ;;  %v914_v43 = vmax.f32 %v822_v34, 0.0  ;;  %v697_v44 = vadd.f32 %v1228_v40, %v1630_v37  ;;  %v825_v45 = vadd.f32 %v1260_v41, %v1630_v37  ;;  %v688_v46 = vpop.f32.mrb[23].mxu0  ;;  %v816_v47 = vpop.f32.mrb[23].mxu1 }
 0x14b   : > { %v880_v48 = vmax.f32 %v686_v38, 0.0  ;;  %v912_v49 = vmax.f32 %v814_v39, 0.0  ;;  %v689_v50 = vadd.f32 %v1630_v37, %v688_v46  ;;  %v817_v51 = vadd.f32 %v1630_v37, %v816_v47 }
 0x14c   : > { %947 = vst.msk [vmem:[%s1638_s29 + $0xb0] sm:$0xff] %vm924_vm3, %v882_v42  ;;  %979 = vst.msk [vmem:[%s1638_s29 + $0x1b0] sm:$0xff] %vm924_vm3, %v914_v43  ;;  %v883_v52 = vmax.f32 %v697_v44, 0.0  ;;  %v915_v53 = vmax.f32 %v825_v45, 0.0 }
 0x14d   : > { %945 = vst.msk [vmem:[%s1638_s29 + $0xa0] sm:$0xff] %vm924_vm3, %v880_v48  ;;  %977 = vst.msk [vmem:[%s1638_s29 + $0x1a0] sm:$0xff] %vm924_vm3, %v912_v49  ;;  %v881_v54 = vmax.f32 %v689_v50, 0.0  ;;  %v913_v55 = vmax.f32 %v817_v51, 0.0 }
 0x14e   : > { %948 = vst.msk [vmem:[%s1638_s29 + $0xb8] sm:$0xff] %vm924_vm3, %v883_v52  ;;  %980 = vst.msk [vmem:[%s1638_s29 + $0x1b8] sm:$0xff] %vm924_vm3, %v915_v53 }
 0x14f   : > { %946 = vst.msk [vmem:[%s1638_s29 + $0xa8] sm:$0xff] %vm924_vm3, %v881_v54  ;;  %978 = vst.msk [vmem:[%s1638_s29 + $0x1a8] sm:$0xff] %vm924_vm3, %v913_v55  ;;  %v1231_v56 = vpop.f32.mrb[24].mxu0  ;;  %v1263_v57 = vpop.f32.mrb[24].mxu1 }
 0x150   : > { %v710_v58 = vadd.f32 %v1231_v56, %v1630_v37  ;;  %v838_v59 = vadd.f32 %v1263_v57, %v1630_v37  ;;  %v701_v60 = vpop.f32.mrb[25].mxu0  ;;  %v829_v61 = vpop.f32.mrb[25].mxu1 }
 0x151   : > { %v702_v62 = vadd.f32 %v1630_v37, %v701_v60  ;;  %v830_v63 = vadd.f32 %v1630_v37, %v829_v61  ;;  %v1232_v0 = vpop.f32.mrb[26].mxu0  ;;  %v1264_v1 = vpop.f32.mrb[26].mxu1 }
 0x152   : > { %v886_v2 = vmax.f32 %v710_v58, 0.0  ;;  %v918_v3 = vmax.f32 %v838_v59, 0.0  ;;  %v713_v4 = vadd.f32 %v1232_v0, %v1630_v37  ;;  %v841_v5 = vadd.f32 %v1264_v1, %v1630_v37  ;;  %v704_v6 = vpop.f32.mrb[27].mxu0  ;;  %v832_v7 = vpop.f32.mrb[27].mxu1 }
 0x153   : > { %v884_v8 = vmax.f32 %v702_v62, 0.0  ;;  %v916_v9 = vmax.f32 %v830_v63, 0.0  ;;  %v705_v10 = vadd.f32 %v1630_v37, %v704_v6  ;;  %v833_v11 = vadd.f32 %v1630_v37, %v832_v7 }
 0x154   : > { %951 = vst.msk [vmem:[%s1638_s29 + $0xd0] sm:$0xff] %vm924_vm3, %v886_v2  ;;  %983 = vst.msk [vmem:[%s1638_s29 + $0x1d0] sm:$0xff] %vm924_vm3, %v918_v3  ;;  %v887_v12 = vmax.f32 %v713_v4, 0.0  ;;  %v919_v13 = vmax.f32 %v841_v5, 0.0 }
 0x155   : > { %949 = vst.msk [vmem:[%s1638_s29 + $0xc0] sm:$0xff] %vm924_vm3, %v884_v8  ;;  %981 = vst.msk [vmem:[%s1638_s29 + $0x1c0] sm:$0xff] %vm924_vm3, %v916_v9  ;;  %v885_v14 = vmax.f32 %v705_v10, 0.0  ;;  %v917_v15 = vmax.f32 %v833_v11, 0.0 }
 0x156   : > { %952 = vst.msk [vmem:[%s1638_s29 + $0xd8] sm:$0xff] %vm924_vm3, %v887_v12  ;;  %984 = vst.msk [vmem:[%s1638_s29 + $0x1d8] sm:$0xff] %vm924_vm3, %v919_v13 }
 0x157   : > { %950 = vst.msk [vmem:[%s1638_s29 + $0xc8] sm:$0xff] %vm924_vm3, %v885_v14  ;;  %982 = vst.msk [vmem:[%s1638_s29 + $0x1c8] sm:$0xff] %vm924_vm3, %v917_v15  ;;  %v1235_v16 = vpop.f32.mrb[28].mxu0  ;;  %v1267_v17 = vpop.f32.mrb[28].mxu1 }
 0x158   : > { %v726_v18 = vadd.f32 %v1235_v16, %v1630_v37  ;;  %v854_v19 = vadd.f32 %v1267_v17, %v1630_v37  ;;  %v717_v20 = vpop.f32.mrb[29].mxu0  ;;  %v845_v21 = vpop.f32.mrb[29].mxu1 }
 0x159   : > { %v718_v22 = vadd.f32 %v1630_v37, %v717_v20  ;;  %v846_v23 = vadd.f32 %v1630_v37, %v845_v21  ;;  %v1236_v24 = vpop.f32.mrb[30].mxu0  ;;  %v1268_v25 = vpop.f32.mrb[30].mxu1 }
 0x15a   : > { %v890_v26 = vmax.f32 %v726_v18, 0.0  ;;  %v922_v27 = vmax.f32 %v854_v19, 0.0  ;;  %v729_v28 = vadd.f32 %v1236_v24, %v1630_v37  ;;  %v857_v29 = vadd.f32 %v1268_v25, %v1630_v37  ;;  %v720_v30 = vpop.f32.mrb[31].mxu0  ;;  %v848_v31 = vpop.f32.mrb[31].mxu1 }
 0x15b   : > { %v888_v32 = vmax.f32 %v718_v22, 0.0  ;;  %v920_v33 = vmax.f32 %v846_v23, 0.0  ;;  %v721_v34 = vadd.f32 %v1630_v37, %v720_v30  ;;  %v849_v35 = vadd.f32 %v1630_v37, %v848_v31 }
 0x15c   : > { %955 = vst.msk [vmem:[%s1638_s29 + $0xf0] sm:$0xff] %vm924_vm3, %v890_v26  ;;  %987 = vst.msk [vmem:[%s1638_s29 + $0x1f0] sm:$0xff] %vm924_vm3, %v922_v27  ;;  %v891_v36 = vmax.f32 %v729_v28, 0.0  ;;  %v923_v38 = vmax.f32 %v857_v29, 0.0 }
 0x15d   : > { %953 = vst.msk [vmem:[%s1638_s29 + $0xe0] sm:$0xff] %vm924_vm3, %v888_v32  ;;  %985 = vst.msk [vmem:[%s1638_s29 + $0x1e0] sm:$0xff] %vm924_vm3, %v920_v33  ;;  %v889_v39 = vmax.f32 %v721_v34, 0.0  ;;  %v921_v40 = vmax.f32 %v849_v35, 0.0 }
 0x15e   : > { %956 = vst.msk [vmem:[%s1638_s29 + $0xf8] sm:$0xff] %vm924_vm3, %v891_v36  ;;  %988 = vst.msk [vmem:[%s1638_s29 + $0x1f8] sm:$0xff] %vm924_vm3, %v923_v38 }
 0x15f   : > { %954 = vst.msk [vmem:[%s1638_s29 + $0xe8] sm:$0xff] %vm924_vm3, %v889_v39  ;;  %986 = vst.msk [vmem:[%s1638_s29 + $0x1e8] sm:$0xff] %vm924_vm3, %v921_v40 }
 0x160 PF: > { %s15_s14 = sadd.s32 1, %s1435_s14   ;;  %s1851_s12 = smov %s1431_s13 }
 0x161   : > { %p12_p6 = scmp.ge.s32.totalorder %s15_s14, 18   ;;  %s1852_s13 = smov %s1854_s16 }
 0x163   :  { %14 = sbr.rel (!%p12_p6) target bundleno = 3 (0x3), region = 73 }
 0x16a   :  { %1017 = vsyncpa [#allocation3], 1 }
 0x16b   :  { %1019 = vsyncpa [#allocation3 + $0x1], 1 }
 0x16c   :  { %1020 = vsyncpa [#allocation5], 1 }

</bundles_post_ra>
